<compile_context>
chip_gen: v6e
topology: v6e:2x2x1
jax: 0.10.0
libtpu: 0.0.40
codegen_flags: <defaults>
</compile_context>

<pallas_src>
import functools

import jax
import jax.numpy as jnp
from jax import lax
from jax.experimental import pallas as pl
from jax.experimental.pallas import tpu as pltpu


def _round_up(x, m):
    return (x + m - 1) // m * m


def _lif_seq_kernel(x_ref, w_ref, v0_ref, i0_ref,
                    spk_ref, v_ref, i_ref,
                    *, alpha, v_decay, dt_over_c, thr, Vr):
    t = pl.program_id(1)

    # Load initial state into the VMEM-resident output blocks on the first step.
    @pl.when(t == 0)
    def _():
        v_ref[...] = v0_ref[...]
        i_ref[...] = i0_ref[...]

    # Synaptic current: I = alpha * I + x @ W.T.
    # W stays in native (n_out, n_in) layout; contract the n_in dims on the MXU.
    cur = lax.dot_general(
        x_ref[0], w_ref[...],
        dimension_numbers=(((1,), (1,)), ((), ())),
        preferred_element_type=jnp.float32)
    I_new = alpha * i_ref[...] + cur

    # Membrane potential: V += dt*(I - beta*V)/C, with dt/C folded into scalars.
    V = v_decay * v_ref[...] + dt_over_c * I_new

    # Spike (Heaviside on V - thr) + reset to Vr where spiking.
    mask = V > thr
    spk_ref[0] = mask.astype(jnp.float32)
    v_ref[...] = jnp.where(mask, Vr, V)
    i_ref[...] = I_new


def lif_forward_sequence(x_seq, w, V0, I0, *, alpha, beta,
                         dt=1.0 / 1000.0, C=1.0, thr=1.0, Vr=0.0):
    """Run T LIF_neuron.forward steps fused in a single Pallas kernel.

    x_seq : (T, B, n_in) f32,  w : (n_out, n_in) f32,  V0/I0 : (B, n_out) f32
    returns (spk (T,B,n_out), V_final (B,n_out), I_final (B,n_out))
    """
    T, B, n_in = x_seq.shape
    n_out = w.shape[0]

    # Lane-dense outputs (n_out -> multiple of 128), sublane-aligned batch
    # (B -> multiple of 8), batch tiles of at most 128 rows.
    n_out_p = _round_up(n_out, 128)
    B_p = _round_up(B, 8)
    tm = B_p if B_p <= 128 else 128
    B_p = _round_up(B_p, tm)
    nb = B_p // tm

    f32 = jnp.float32
    xp = jnp.asarray(x_seq, f32)
    wp = jnp.asarray(w, f32)
    Vp = jnp.asarray(V0, f32)
    Ip = jnp.asarray(I0, f32)
    if B_p != B:
        xp = jnp.pad(xp, ((0, 0), (0, B_p - B), (0, 0)))
    if n_out_p != n_out:
        wp = jnp.pad(wp, ((0, n_out_p - n_out), (0, 0)))
    if B_p != B or n_out_p != n_out:
        Vp = jnp.pad(Vp, ((0, B_p - B), (0, n_out_p - n_out)))
        Ip = jnp.pad(Ip, ((0, B_p - B), (0, n_out_p - n_out)))

    kernel = functools.partial(
        _lif_seq_kernel,
        alpha=float(alpha),
        v_decay=float(1.0 - beta * dt / C),
        dt_over_c=float(dt / C),
        thr=float(thr), Vr=float(Vr))

    out_shapes = (
        jax.ShapeDtypeStruct((T, B_p, n_out_p), f32),   # spikes, every step
        jax.ShapeDtypeStruct((B_p, n_out_p), f32),      # final V
        jax.ShapeDtypeStruct((B_p, n_out_p), f32),      # final I
    )

    spk, Vn, In = pl.pallas_call(
        kernel,
        out_shape=out_shapes,
        grid=(nb, T),
        in_specs=[
            # x: one timestep slab per grid step
            pl.BlockSpec((1, tm, n_in), lambda b, t: (t, b, 0)),
            # W: index_map ignores the grid -> loaded once, stays VMEM-resident
            pl.BlockSpec((n_out_p, n_in), lambda b, t: (0, 0)),
            # initial state: loaded once per batch tile
            pl.BlockSpec((tm, n_out_p), lambda b, t: (b, 0)),
            pl.BlockSpec((tm, n_out_p), lambda b, t: (b, 0)),
        ],
        out_specs=(
            pl.BlockSpec((1, tm, n_out_p), lambda b, t: (t, b, 0)),
            # carried state: block index independent of t -> resident accumulator
            pl.BlockSpec((tm, n_out_p), lambda b, t: (b, 0)),
            pl.BlockSpec((tm, n_out_p), lambda b, t: (b, 0)),
        ),
        compiler_params=pltpu.CompilerParams(
            dimension_semantics=("parallel", "arbitrary")),
        # TODO(synk): for large n_in*n_out raise vmem_limit_bytes so the full
        # weight stays resident (v7x has 64 MiB VMEM vs 128 MiB on v5e/v6e).
    )(xp, wp, Vp, Ip)

    return spk[:, :B, :n_out], Vn[:B, :n_out], In[:B, :n_out]


def lif_forward(x, w, V, I, *, alpha, beta, dt=1.0 / 1000.0, C=1.0,
                thr=1.0, Vr=0.0):
    """Single LIF_neuron.forward step (module semantics)."""
    spk, Vn, In = lif_forward_sequence(x[None], w, V, I, alpha=alpha, beta=beta,
                                       dt=dt, C=C, thr=thr, Vr=Vr)
    return spk[0], Vn, In


def lif_reference_sequence(x_seq, w, V, I, *, alpha, beta,
                           dt=1.0 / 1000.0, C=1.0, thr=1.0, Vr=0.0):
    """Pure-JAX reference with the exact PyTorch-module arithmetic."""
    spks = []
    for t in range(x_seq.shape[0]):
        I = alpha * I + x_seq[t] @ w.T
        V = V + dt * (I - beta * V) / C
        spk = (V - thr > 0.0).astype(jnp.float32)
        V = (1.0 - spk) * V + spk * Vr
        spks.append(spk)
    return jnp.stack(spks), V, I


if __name__ == "__main__":
    T, B, n_in, n_out = 8, 8, 64, 32
    alpha, beta = 0.95, 0.9

    key = jax.random.PRNGKey(0)
    kx, kw = jax.random.split(key)

    bound = 1.0 / jnp.sqrt(jnp.float32(n_in))      # nn.Linear default init range
    w = jax.random.uniform(kw, (n_out, n_in), jnp.float32, -bound, bound)
    # Input scaled so some neurons actually spike.
    x_seq = 50.0 * jax.random.normal(kx, (T, B, n_in), jnp.float32)

    V0 = jnp.ones((B, n_out), jnp.float32)         # init as in LIF_neuron.forward
    I0 = jnp.zeros((B, n_out), jnp.float32)

    spk, V1, I1 = lif_forward_sequence(x_seq, w, V0, I0, alpha=alpha, beta=beta)
    jax.block_until_ready((spk, V1, I1))

    # Single-step API (module's forward) also runs through the same kernel.
    spk1, _, I1s = lif_forward(x_seq[0], w, V0, I0, alpha=alpha, beta=beta)
    jax.block_until_ready((spk1, I1s))

    spk_r, V_r, I_r = lif_reference_sequence(x_seq, w, V0, I0, alpha=alpha, beta=beta)

    # I has no spike feedback -> compare directly.
    assert jnp.allclose(I1, I_r, rtol=1e-4, atol=1e-3), "I mismatch"
    assert jnp.allclose(I1s, alpha * I0 + x_seq[0] @ w.T, rtol=1e-4, atol=1e-3), \
        "single-step I mismatch"

    # Spikes: a V value within ~1 ulp of thr can flip vs the reference because
    # matmul accumulation order / the algebraically-folded V update differ at
    # rounding level.  Require (almost) every neuron's full spike train to match,
    # and compare V only where it does (a legitimate flip changes V by ~thr-Vr).
    agree = jnp.all(spk == spk_r, axis=0)                    # (B, n_out)
    n_diverged = int(jnp.sum(~agree))
    assert n_diverged <= max(2, (B * n_out) // 100), \
        f"too many diverged spike trains: {n_diverged}"
    assert jnp.allclose(jnp.where(agree, V1, 0.0), jnp.where(agree, V_r, 0.0),
                        rtol=1e-4, atol=1e-3), "V mismatch"

    print("KERNEL_OK")
</pallas_src>

<mosaic_0001>
module attributes {stable_mosaic.version = 11 : i64} {
  func.func @_lif_seq_kernel(%arg0: i32, %arg1: i32, %arg2: memref<1x8x64xf32, #tpu.memory_space<vmem>>, %arg3: memref<128x64xf32, #tpu.memory_space<vmem>>, %arg4: memref<8x128xf32, #tpu.memory_space<vmem>>, %arg5: memref<8x128xf32, #tpu.memory_space<vmem>>, %arg6: memref<1x8x128xf32, #tpu.memory_space<vmem>>, %arg7: memref<8x128xf32, #tpu.memory_space<vmem>>, %arg8: memref<8x128xf32, #tpu.memory_space<vmem>>) attributes {dimension_semantics = [#tpu.dimension_semantics<parallel>, #tpu.dimension_semantics<arbitrary>], iteration_bounds = array<i64: 1, 8>, scalar_prefetch = 0 : i64, scratch_operands = 0 : i64, tpu.core_type = #tpu.core_type<tc>, window_params = [{transform_indices = @transform_0, window_bounds = array<i64: 1, 8, 64>}, {pipeline_mode = #tpu.pipeline_mode<synchronous>, transform_indices = @transform_1, window_bounds = array<i64: 128, 64>}, {transform_indices = @transform_2, window_bounds = array<i64: 8, 128>}, {transform_indices = @transform_3, window_bounds = array<i64: 8, 128>}, {transform_indices = @transform_4, window_bounds = array<i64: 1, 8, 128>}, {transform_indices = @transform_5, window_bounds = array<i64: 8, 128>}, {transform_indices = @transform_6, window_bounds = array<i64: 8, 128>}]} {
    %c0_i32 = arith.constant 0 : i32
    %0 = arith.cmpi eq, %arg1, %c0_i32 : i32
    %1 = arith.extui %0 : i1 to i32
    %c0_i32_0 = arith.constant 0 : i32
    %2 = arith.cmpi ne, %1, %c0_i32_0 : i32
    scf.if %2 {
      %c0_21 = arith.constant 0 : index
      %c0_22 = arith.constant 0 : index
      %28 = vector.load %arg4[%c0_21, %c0_22] : memref<8x128xf32, #tpu.memory_space<vmem>>, vector<8x128xf32>
      %c0_23 = arith.constant 0 : index
      %c0_24 = arith.constant 0 : index
      %29 = vector.load %arg7[%c0_23, %c0_24] : memref<8x128xf32, #tpu.memory_space<vmem>>, vector<8x128xf32>
      tpu.vector_store %arg7[%c0_23, %c0_24], %28 {strides = array<i32>} : memref<8x128xf32, #tpu.memory_space<vmem>>, vector<8x128xf32>,
      %c0_25 = arith.constant 0 : index
      %c0_26 = arith.constant 0 : index
      %30 = vector.load %arg5[%c0_25, %c0_26] : memref<8x128xf32, #tpu.memory_space<vmem>>, vector<8x128xf32>
      %c0_27 = arith.constant 0 : index
      %c0_28 = arith.constant 0 : index
      %31 = vector.load %arg8[%c0_27, %c0_28] : memref<8x128xf32, #tpu.memory_space<vmem>>, vector<8x128xf32>
      tpu.vector_store %arg8[%c0_27, %c0_28], %30 {strides = array<i32>} : memref<8x128xf32, #tpu.memory_space<vmem>>, vector<8x128xf32>,
    } else {
    }
    %c0 = arith.constant 0 : index
    %c0_1 = arith.constant 0 : index
    %c0_2 = arith.constant 0 : index
    %3 = vector.load %arg2[%c0, %c0_1, %c0_2] : memref<1x8x64xf32, #tpu.memory_space<vmem>>, vector<1x8x64xf32>
    %4 = vector.shape_cast %3 : vector<1x8x64xf32> to vector<8x64xf32>
    %c0_3 = arith.constant 0 : index
    %c0_4 = arith.constant 0 : index
    %5 = vector.load %arg3[%c0_3, %c0_4] : memref<128x64xf32, #tpu.memory_space<vmem>>, vector<128x64xf32>
    %cst = arith.constant dense<0.000000e+00> : vector<8x128xf32>
    %6 = tpu.matmul %4, %5, %cst {dimension_numbers = #tpu.dot_dimension_numbers<[1], [1], [0], [0], [0, 0, 1, 0], [], []>} : vector<8x64xf32>, vector<128x64xf32>, vector<8x128xf32> -> vector<8x128xf32>
    %c0_5 = arith.constant 0 : index
    %c0_6 = arith.constant 0 : index
    %7 = vector.load %arg8[%c0_5, %c0_6] : memref<8x128xf32, #tpu.memory_space<vmem>>, vector<8x128xf32>
    %cst_7 = arith.constant 0.949999988 : f32
    %8 = vector.broadcast %cst_7 : f32 to vector<8x128xf32>
    %9 = arith.mulf %8, %7 : vector<8x128xf32>
    %10 = arith.addf %9, %6 : vector<8x128xf32>
    %c0_8 = arith.constant 0 : index
    %c0_9 = arith.constant 0 : index
    %11 = vector.load %arg7[%c0_8, %c0_9] : memref<8x128xf32, #tpu.memory_space<vmem>>, vector<8x128xf32>
    %cst_10 = arith.constant 9.991000e-01 : f32
    %12 = vector.broadcast %cst_10 : f32 to vector<8x128xf32>
    %13 = arith.mulf %12, %11 : vector<8x128xf32>
    %cst_11 = arith.constant 1.000000e-03 : f32
    %14 = vector.broadcast %cst_11 : f32 to vector<8x128xf32>
    %15 = arith.mulf %14, %10 : vector<8x128xf32>
    %16 = arith.addf %13, %15 : vector<8x128xf32>
    %cst_12 = arith.constant 1.000000e+00 : f32
    %17 = vector.broadcast %cst_12 : f32 to vector<8x128xf32>
    %18 = arith.cmpf ogt, %16, %17 : vector<8x128xf32>
    %19 = arith.extui %18 : vector<8x128xi1> to vector<8x128xi32>
    %20 = arith.sitofp %19 : vector<8x128xi32> to vector<8x128xf32>
    %c0_13 = arith.constant 0 : index
    %c0_14 = arith.constant 0 : index
    %c0_15 = arith.constant 0 : index
    %21 = vector.load %arg6[%c0_13, %c0_14, %c0_15] : memref<1x8x128xf32, #tpu.memory_space<vmem>>, vector<1x8x128xf32>
    %22 = vector.shape_cast %21 : vector<1x8x128xf32> to vector<8x128xf32>
    %23 = vector.shape_cast %20 : vector<8x128xf32> to vector<1x8x128xf32>
    tpu.vector_store %arg6[%c0_13, %c0_14, %c0_15], %23 {strides = array<i32>} : memref<1x8x128xf32, #tpu.memory_space<vmem>>, vector<1x8x128xf32>,
    %cst_16 = arith.constant 0.000000e+00 : f32
    %24 = vector.broadcast %cst_16 : f32 to vector<8x128xf32>
    %25 = arith.select %18, %24, %16 : vector<8x128xi1>, vector<8x128xf32>
    %c0_17 = arith.constant 0 : index
    %c0_18 = arith.constant 0 : index
    %26 = vector.load %arg7[%c0_17, %c0_18] : memref<8x128xf32, #tpu.memory_space<vmem>>, vector<8x128xf32>
    tpu.vector_store %arg7[%c0_17, %c0_18], %25 {strides = array<i32>} : memref<8x128xf32, #tpu.memory_space<vmem>>, vector<8x128xf32>,
    %c0_19 = arith.constant 0 : index
    %c0_20 = arith.constant 0 : index
    %27 = vector.load %arg8[%c0_19, %c0_20] : memref<8x128xf32, #tpu.memory_space<vmem>>, vector<8x128xf32>
    tpu.vector_store %arg8[%c0_19, %c0_20], %10 {strides = array<i32>} : memref<8x128xf32, #tpu.memory_space<vmem>>, vector<8x128xf32>,
    return
  }
  func.func @transform_0(%arg0: i32, %arg1: i32) -> (i32, i32, i32) {
    %c0_i32 = arith.constant 0 : i32
    %c0_i32_0 = arith.constant 0 : i32
    return %arg1, %arg0, %c0_i32 : i32, i32, i32
  }
  func.func @transform_1(%arg0: i32, %arg1: i32) -> (i32, i32) {
    %c0_i32 = arith.constant 0 : i32
    %c0_i32_0 = arith.constant 0 : i32
    %c0_i32_1 = arith.constant 0 : i32
    return %c0_i32, %c0_i32_0 : i32, i32
  }
  func.func @transform_2(%arg0: i32, %arg1: i32) -> (i32, i32) {
    %c0_i32 = arith.constant 0 : i32
    %c0_i32_0 = arith.constant 0 : i32
    return %arg0, %c0_i32 : i32, i32
  }
  func.func @transform_3(%arg0: i32, %arg1: i32) -> (i32, i32) {
    %c0_i32 = arith.constant 0 : i32
    %c0_i32_0 = arith.constant 0 : i32
    return %arg0, %c0_i32 : i32, i32
  }
  func.func @transform_4(%arg0: i32, %arg1: i32) -> (i32, i32, i32) {
    %c0_i32 = arith.constant 0 : i32
    %c0_i32_0 = arith.constant 0 : i32
    return %arg1, %arg0, %c0_i32 : i32, i32, i32
  }
  func.func @transform_5(%arg0: i32, %arg1: i32) -> (i32, i32) {
    %c0_i32 = arith.constant 0 : i32
    %c0_i32_0 = arith.constant 0 : i32
    return %arg0, %c0_i32 : i32, i32
  }
  func.func @transform_6(%arg0: i32, %arg1: i32) -> (i32, i32) {
    %c0_i32 = arith.constant 0 : i32
    %c0_i32_0 = arith.constant 0 : i32
    return %arg0, %c0_i32 : i32, i32
  }
}

</mosaic_0001>

<bundles_post_ra>
// kernel: tpu_custom_call.1
= control target key start
LH: loop header
LB: loop body
LE: loop exit
PB: predicated region body
PF: predicated region fallthrough
CT: control target
= control target key end

     0   :  { %12 = vsyncpa [#allocation3], 0  ;;  %s1215_s0 = inlined_call_operand.vmem [shape: f32[8,8,64], index: 0, kind: input, shape index: {}]   ;;  %s1216_s1 = inlined_call_operand.vmem [shape: f32[128,64], index: 1, kind: input, shape index: {}]   ;;  %s1217_s2 = inlined_call_operand.vmem [shape: f32[8,128], index: 2, kind: input, shape index: {}]   ;;  %s1218_s3 = inlined_call_operand.vmem [shape: f32[8,128], index: 3, kind: input, shape index: {}]   ;;  %s1219_s4 = inlined_call_operand.hbm [shape: f32[8,8,128], index: 4, kind: output, shape index: {0}]   ;;  %s1220_s5 = inlined_call_operand.hbm [shape: f32[8,128], index: 5, kind: output, shape index: {1}]   ;;  %s1221_s6 = inlined_call_operand.hbm [shape: f32[8,128], index: 6, kind: output, shape index: {2}]  }
   0x1   :  { %14 = vsyncpa [#allocation3 + $0x1], 0 }
   0x2   :  { %15 = vsyncpa [#allocation5], 0  ;;  %s969_s21 = smov 0   ;;  %s971_s22 = smov 0  }
   0x3   :  { %s973_s23 = smov 0   ;;  %s975_s24 = smov 0  }
   0x4   :  { %s977_s25 = smov 0   ;;  %s979_s26 = smov 0  }
   0x5 LB: > { %s640_s27 = sadd.s32 4294967295, %s927_s26   ;;  %s641_s28 = sadd.s32 4294967294, %s927_s26   ;;  %s927_s26 = sphi %s979_s26, %s21_s26   ;;  %s923_s25 = sphi %s977_s25, %s1229_s25   ;;  %s919_s24 = sphi %s975_s24, %s1228_s24   ;;  %s915_s23 = sphi %s973_s23, %s1227_s23   ;;  %s911_s22 = sphi %s971_s22, %s1226_s22   ;;  %s907_s21 = sphi %s969_s21, %s1225_s21  }
   0x6   : > { %s30_s29 = sadd.s32 1, %s923_s25  ;;  %s143_s30 = sadd.s32 1, %s915_s23 }
   0x7   : > { %p31_p0 = scmp.ge.s32.totalorder %s30_s29, 8  ;;  %p153_p1 = scmp.ne.s32.totalorder %s915_s23, %s911_s22 }
   0x8   : > { %p1005_p2 = scmp.eq.s32.totalorder %s640_s27, 7  ;;  %p159_p3 = scmp.ne.s32.totalorder %s911_s22, %s907_s21 }
   0x9   : > { %s1231_s29 = smov (%p31_p0, %s30_s29), 0  ;;  %p160_p5 = scmp.eq.s32.totalorder %s641_s28, 7 }
   0xa   : > { %p1015_p4 = por %p1005_p2, %p153_p1  ;;  %s138_s9 = ssub.s32 %s923_s25, %s1231_s29 }
   0xb   : > { %p646_p6 = scmp.ge.s32.totalorder %s927_s26, 1  ;;  %p141_p7 = scmp.eq.s32.totalorder %s138_s9, 0 }
   0xc   : > { %p1022_p8 = por %p160_p5, %p159_p3  ;;  %p257_p9 = scmp.lt.s32.totalorder %s927_s26, 9 }
   0xd   : > { %s1028_s11 = scalar_select %p141_p7, %s915_s23, %s143_s30  }
   0xe   : > { %p258_p10 = pnand %p646_p6, %p257_p9 }
   0xf   : > { %s290_s12 = sand.u32 (!%p258_p10), 1, %s911_s22   ;;  %p297_p11 = scmp.lt.s32.totalorder (!%p258_p10), %s919_s24, 7 }
  0x10   : > { %261 = sbr.rel (%p258_p10) target bundleno = 334 (0x14e), region = 36  ;;  %s1034_s13 = sshll.u32 (!%p258_p10), %s290_s12, 3 }
  0x11   : > { %s292_s19 = scalar_lea.vmem (!%p258_p10), [#allocation2], %s1034_s13  ;;  %p649_p12 = scmp.ne.s32.totalorder (!%p258_p10), %s919_s24, 0 }
  0x15   : > { %s298_s14 = scalar_select %p297_p11, %s919_s24, 7 }
  0x16   : > { %315 = sbr.rel (%p649_p12) target bundleno = 30 (0x1e), region = 40 }
  0x17   : > { %s648_s15 = sshll.u32 %s298_s14, 3 }
  0x18   : > { %s1040_s18 = scalar_lea.vmem %s1215_s0, %s648_s15 }
  0x1b   : > { %v316_v0 = vld [vmem:[%s1217_s2] sm:$0xff] }
  0x1c   : > { %v318_v1 = vld [vmem:[%s1218_s3] sm:$0xff]  ;;  %317 = vst [vmem:[#allocation4] sm:$0xff] %v316_v0 }
  0x1d   : > { %319 = vst [vmem:[#allocation6] sm:$0xff] %v318_v1 }
  0x1e PF: > { %v336_v2 = vld [vmem:[%s1216_s1 + $0x78] sm:$0xff]  ;;  %vm337_vm0 = vcmask 523264   ;;  %v929_v3 = vmov 0.0   ;;  %vm930_vm1 = vmmov 0   ;;  %v335_v4 = vld [vmem:[%s1216_s1 + $0x70] sm:$0xff]  ;;  %v334_v5 = vld [vmem:[%s1216_s1 + $0x68] sm:$0xff] }
  0x1f   : > { %693 = vmatprep.subr.mxu0 %v929_v3  ;;  %725 = vmatprep.mubr.msk.f32.mxu0 %vm930_vm1, %v929_v3  ;;  %v333_v6 = vld [vmem:[%s1216_s1 + $0x60] sm:$0xff]  ;;  %v332_v7 = vld [vmem:[%s1216_s1 + $0x58] sm:$0xff]  ;;  %v331_v8 = vld [vmem:[%s1216_s1 + $0x50] sm:$0xff]  ;;  %s931_s20 = smov [#allocation4]   ;;  %s669_s28 = sshll.u32 %s919_s24, 7 }
  0x20   : > { %694 = vmatpush3.xpose.msk.msra.mxu0 %vm337_vm0, %v336_v2  ;;  %v330_v9 = vld [vmem:[%s1216_s1 + $0x48] sm:$0xff]  ;;  %v329_v10 = vld [vmem:[%s1216_s1 + $0x40] sm:$0xff]  ;;  %v328_v11 = vld [vmem:[%s1216_s1 + $0x38] sm:$0xff]  ;;  %s501_s27 = sshll.u32 %s931_s20, 4  ;;  %s488_s30 = sshll.u32 %s292_s19, 4  ;;  %s502_s27 = int_to_ptr.vmem [resolvable:$true] %s501_s27  ;;  %s1142_s30 = int_to_ptr.vmem [resolvable:$true] %s488_s30 }
  0x21   : > { %695 = vmatprep.subr.mxu0 %v929_v3  ;;  %v327_v12 = vld [vmem:[%s1216_s1 + $0x30] sm:$0xff]  ;;  %v326_v13 = vld [vmem:[%s1216_s1 + $0x28] sm:$0xff]  ;;  %v325_v14 = vld [vmem:[%s1216_s1 + $0x20] sm:$0xff]  ;;  %s1140_s16 = scalar_lea.hbm %s1219_s4, %s669_s28  ;;  %s799_s24 = scalar_lea.vmem %s502_s27, 128 }
  0x22   : > { %v324_v15 = vld [vmem:[%s1216_s1 + $0x18] sm:$0xff]  ;;  %v323_v16 = vld [vmem:[%s1216_s1 + $0x10] sm:$0xff]  ;;  %v322_v17 = vld [vmem:[%s1216_s1 + $0x8] sm:$0xff]  ;;  %p800_p13 = scmp.ne.s32.totalorder %s502_s27, %s799_s24  ;;  %p806_p3 = scmp.lt.s32.totalorder %s502_s27, %s502_s27 }
  0x23   : > { %v321_v18 = vld [vmem:[%s1216_s1] sm:$0xff]  ;;  %v462_v22 = vld [vmem:[#allocation4] sm:$0xff]  ;;  %p807_p5 = scmp.lt.s32.totalorder %s799_s24, %s799_s24 }
  0x24   : > { %696 = vmatpush3.xpose.msk.msra.mxu0 %vm337_vm0, %v335_v4  ;;  %v320_v19 = vld [vmem:[%s1040_s18] sm:$0xff]  ;;  %v459_v20 = vld [vmem:[#allocation6] sm:$0xff]  ;;  %v463_v25 = vmul.f32 0.9991, %v462_v22  ;;  %s932_s18 = smov [#allocation6]   ;;  %p801_p0 = pnand %p800_p13, %p1005_p2 }
  0x25   : > { %697 = vmatprep.subr.mxu0 %v929_v3  ;;  %v460_v21 = vmul.f32 0.95, %v459_v20  ;;  %s514_s9 = sshll.u32 %s932_s18, 4  ;;  %p808_p6 = por %p807_p5, %p806_p3  ;;  %s1146_s9 = int_to_ptr.vmem [resolvable:$true] %s514_s9 }
  0x26   : > { %p802_p1 = pneg %p801_p0 }
  0x28   : > { %698 = vmatpush3.xpose.msk.msra.mxu0 %vm337_vm0, %v334_v5  ;;  %p809_p7 = pnand %p808_p6, %p802_p1 }
  0x29   : > { %699 = vmatprep.subr.mxu0 %v929_v3 }
  0x2c   : > { %700 = vmatpush3.xpose.msk.msra.mxu0 %vm337_vm0, %v333_v6 }
  0x2d   : > { %701 = vmatprep.subr.mxu0 %v929_v3 }
  0x30   : > { %702 = vmatpush3.xpose.msk.msra.mxu0 %vm337_vm0, %v332_v7 }
  0x31   : > { %703 = vmatprep.subr.mxu0 %v929_v3 }
  0x34   : > { %704 = vmatpush3.xpose.msk.msra.mxu0 %vm337_vm0, %v331_v8 }
  0x35   : > { %705 = vmatprep.subr.mxu0 %v929_v3 }
  0x38   : > { %706 = vmatpush3.xpose.msk.msra.mxu0 %vm337_vm0, %v330_v9 }
  0x39   : > { %707 = vmatprep.subr.mxu0 %v929_v3 }
  0x3c   : > { %708 = vmatpush3.xpose.msk.msra.mxu0 %vm337_vm0, %v329_v10 }
  0x3d   : > { %709 = vmatprep.subr.mxu0 %v929_v3 }
  0x40   : > { %710 = vmatpush3.xpose.msk.msra.mxu0 %vm337_vm0, %v328_v11 }
  0x41   : > { %711 = vmatprep.subr.mxu0 %v929_v3 }
  0x44   : > { %712 = vmatpush3.xpose.msk.msra.mxu0 %vm337_vm0, %v327_v12 }
  0x45   : > { %713 = vmatprep.subr.mxu0 %v929_v3 }
  0x48   : > { %714 = vmatpush3.xpose.msk.msra.mxu0 %vm337_vm0, %v326_v13 }
  0x49   : > { %715 = vmatprep.subr.mxu0 %v929_v3 }
  0x4c   : > { %716 = vmatpush3.xpose.msk.msra.mxu0 %vm337_vm0, %v325_v14 }
  0x4d   : > { %717 = vmatprep.subr.mxu0 %v929_v3 }
  0x50   : > { %718 = vmatpush3.xpose.msk.msra.mxu0 %vm337_vm0, %v324_v15 }
  0x51   : > { %719 = vmatprep.subr.mxu0 %v929_v3 }
  0x54   : > { %720 = vmatpush3.xpose.msk.msra.mxu0 %vm337_vm0, %v323_v16 }
  0x55   : > { %721 = vmatprep.subr.mxu0 %v929_v3 }
  0x58   : > { %722 = vmatpush3.xpose.msk.msra.mxu0 %vm337_vm0, %v322_v17 }
  0x59   : > { %723 = vmatprep.subr.mxu0 %v929_v3 }
  0x5c   : > { %724 = vmatpush3.xpose.msk.msra.mxu0 %vm337_vm0, %v321_v18 }
  0x5f   : > { %726 = vmatmul.mubr.msk.f32.vlgmr.msra.gmra.mxu0 %vm337_vm0, %v320_v19 }
 0x11f   : > { %v455_v23 = vpop.f32.mrf.mxu0 }
 0x120   : > { %v461_v24 = vadd.f32 %v460_v21, %v455_v23 }
 0x121   : > { %v727_v26 = vpop.f32.mrf.mxu0 }
 0x122   : > { %v464_v27 = vmul.f32 0.001, %v461_v24  ;;  %472 = vst [vmem:[#allocation6] sm:$0xff] %v461_v24 }
 0x124   : > { %v465_v28 = vadd.f32 %v464_v27, %v463_v25 }
 0x126   : > { %vm466_vm2 = vcmp.gt.f32.partialorder %v465_v28, 1.0 }
 0x127   : > { %v667_v29 = vsel %vm466_vm2, 1.0, %v929_v3  ;;  %v470_v30 = vsel %vm466_vm2, 0.0, %v465_v28 }
 0x128   : > { %471 = vst [vmem:[#allocation4] sm:$0xff] %v470_v30  ;;  %469 = vst [vmem:[%s292_s19] sm:$0xff] %v667_v29 }
 0x129   : > { %812 = shalt.err (!%p809_p7)
}
 0x12a   : > { %730 = dma.vmem_to_hbm [thread:$0]  (%p1005_p2), %s502_s27, 128, %s1220_s5, [#allocation5]  }
 0x12b   : > { %s474_s13 = scalar_lea.sflag [#allocation3], %s290_s12  ;;  %s823_s19 = scalar_lea.vmem %s1142_s30, 128 }
 0x12c   : > { %p824_p9 = scmp.ne.s32.totalorder %s1142_s30, %s823_s19  ;;  %s933_s28 = smov [#allocation2]  }
 0x12d   : > { %s827_s18 = sshll.u32 %s933_s28, 4  ;;  %s828_s18 = int_to_ptr.vmem [resolvable:$false] %s827_s18 }
 0x12e   : > { %p825_p10 = pnand %p824_p9, %p1015_p4  ;;  %s829_s14 = scalar_lea.vmem %s828_s18, 256 }
 0x12f   : > { %p830_p12 = scmp.lt.s32.totalorder %s1142_s30, %s828_s18  ;;  %p831_p13 = scmp.lt.s32.totalorder %s829_s14, %s823_s19 }
 0x130   : > { %p826_p11 = pneg %p825_p10 }
 0x131   : > { %p832_p0 = por %p831_p13, %p830_p12 }
 0x133   : > { %p833_p1 = pnand %p832_p0, %p826_p11 }
 0x135   : > { %836 = shalt.err (!%p833_p1)
}
 0x136   : > { %s837_s27 = scalar_lea.hbm %s1140_s16, 128  ;;  %s841_s24 = scalar_lea.hbm %s1219_s4, 1024 }
 0x137   : > { %p838_p3 = scmp.ne.s32.totalorder %s1140_s16, %s837_s27  ;;  %p842_p7 = scmp.lt.s32.totalorder %s1140_s16, %s1219_s4 }
 0x138   : > { %p843_p9 = scmp.lt.s32.totalorder %s841_s24, %s837_s27 }
 0x139   : > { %p839_p5 = pnand %p838_p3, %p1015_p4 }
 0x13a   : > { %p844_p10 = por %p843_p9, %p842_p7 }
 0x13b   : > { %p840_p6 = pneg %p839_p5 }
 0x13d   : > { %p845_p11 = pnand %p844_p10, %p840_p6 }
 0x13f   : > { %848 = shalt.err (!%p845_p11)
}
 0x140   : > { %728 = dma.vmem_to_hbm [thread:$0]  (%p1015_p4), %s1142_s30, 128, %s1140_s16, %s474_s13  }
 0x141   : > { %s849_s19 = scalar_lea.vmem %s1146_s9, 128  ;;  %p856_p1 = scmp.lt.s32.totalorder %s1146_s9, %s1146_s9 }
 0x142   : > { %p850_p12 = scmp.ne.s32.totalorder %s1146_s9, %s849_s19  ;;  %p857_p3 = scmp.lt.s32.totalorder %s849_s19, %s849_s19 }
 0x144   : > { %p851_p13 = pnand %p850_p12, %p1005_p2  ;;  %p858_p5 = por %p857_p3, %p856_p1 }
 0x146   : > { %p852_p0 = pneg %p851_p13 }
 0x148   : > { %p859_p6 = pnand %p858_p5, %p852_p0 }
 0x14a   : > { %862 = shalt.err (!%p859_p6)
}
 0x14b   : > { %732 = dma.vmem_to_hbm [thread:$0]  (%p1005_p2), %s1146_s9, 128, %s1221_s6, [#allocation5]  }
 0x14c   : > { %898 = dma.done.wait (%p1005_p2), [#allocation5], 256  }
 0x14d   : > { %900 = vsyncadd (%p1005_p2), [#allocation5], 4294967040 }
 0x14e PF: > { %p746_p4 = scmp.ge.s32.totalorder %s927_s26, 2  ;;  %s534_s30 = sand.u32 1, %s907_s21  }
 0x14f   : > { %s535_s16 = scalar_lea.sflag [#allocation3], %s534_s30 }
 0x150   : > { %p739_p7 = pnand %p746_p4, %p1022_p8 }
 0x152   : > { %p740_p9 = pneg %p739_p7 }
 0x154   : > { %902 = dma.done.wait (%p740_p9), %s535_s16, 128  }
 0x155   : > { %904 = vsyncadd (%p740_p9), %s535_s16, 4294967168  ;;  %s21_s26 = sadd.s32 1, %s927_s26   ;;  %s1225_s21 = smov %s911_s22 }
 0x156   : > { %p18_p10 = scmp.ge.s32.totalorder %s21_s26, 10   ;;  %s1226_s22 = smov %s915_s23 }
 0x157   : > { %s1227_s23 = smov %s1028_s11  ;;  %s1228_s24 = smov %s923_s25 }
 0x158   : > { %s1229_s25 = smov %s1231_s29  ;;  %20 = sbr.rel (!%p18_p10) target bundleno = 5 (0x5), region = 99 }
 0x15d   :  { %540 = vsyncpa [#allocation3], 1 }
 0x15e   :  { %542 = vsyncpa [#allocation3 + $0x1], 1 }
 0x15f   :  { %543 = vsyncpa [#allocation5], 1 }

</bundles_post_ra>
